<compile_context>
chip_gen: v5e
topology: v5e:2x2
jax: 0.10.0
libtpu: 0.0.40
codegen_flags: <defaults>
</compile_context>

<pallas_src>
import jax
import jax.numpy as jnp
from jax.experimental import pallas as pl
from jax.experimental.pallas import tpu as pltpu

# ----------------------------- configuration ------------------------------
B = 2
ENC_IN = 4                          # N  (variates / channels)
SEQ_LEN = 16                        # L  (time)
PATCH_LEN = 8                       # temp_attn_params.temp_patch_len
STRIDE = 4                          # temp_attn_params.temp_stride
D_MODEL = 32                        # temp_attn_params.d_model
TOKEN_NUM = (SEQ_LEN - PATCH_LEN) // STRIDE + 1   # temp_token_num = 3
TD = TOKEN_NUM * D_MODEL                          # flattened token width = 96
LN_EPS = 1e-5
_SQRT_HALF = 0.7071067811865476
_HI = jax.lax.Precision.HIGHEST


# ------------------------------- fused kernel -------------------------------
def _encoder_kernel(x_ref, m_ref, taps_ref, wcat_ref, p96_ref, w2_ref, p32_ref, o_ref):
    L = x_ref.shape[1]
    x = x_ref[...]                                   # (rb, L) f32
    m = m_ref[...].astype(jnp.float32)               # (rb, L) int8 mask -> f32

    taps = taps_ref[...]                             # (rb, 4) alpha-folded conv taps + bias
    cw0 = taps[:, 0:1]
    cw1 = taps[:, 1:2]
    cw2 = taps[:, 2:3]
    cb = taps[:, 3:4]

    wcat = wcat_ref[...]                             # (L, 2L + TD) = [Sp | Sn | W1_unfold]
    smat = wcat[:, :2 * L]
    w1u = wcat[:, 2 * L:]

    # ---- fix_mask_with_neighbor: depthwise Conv1d(k=3,'same',zeros) gate ----
    # Neighbor shifts via ONE exact (HIGHEST precision) matmul against the constant [Sp|Sn];
    # sigmoid(alpha) is already folded into the per-row taps.
    sh = jnp.dot(x, smat, precision=_HI, preferred_element_type=jnp.float32)   # (rb, 2L)
    x_prev = sh[:, :L]                               # x[:, l-1], 0 at l=0
    x_next = sh[:, L:]                               # x[:, l+1], 0 at l=L-1
    x2 = cw0 * x_prev + cw1 * x + cw2 * x_next + cb
    xf = jnp.where(m > 0.5, x2, x)                   # torch.where(mask, smoothed, original)

    # ---- unfold + projector1 + positional_encoding in a single matmul ----
    # h lanes are token-major: [t0*D .. t0*D+D-1, t1*D .., t2*D ..]
    h = (jnp.dot(xf, w1u, precision=_HI, preferred_element_type=jnp.float32)
         + p96_ref[0:1, :])                          # + (b1 + pos_enc) flattened

    # ---- per-token LayerNorm (norm0): stats on static 32-lane slices, merged back with
    #      lane-iota selects so projector2 stays a single lane-dense matmul ----
    mus, vrs = [], []
    for t in range(TOKEN_NUM):                       # static unroll (T = 3)
        ht = h[:, t * D_MODEL:(t + 1) * D_MODEL]
        mu = jnp.mean(ht, axis=-1, keepdims=True)
        mus.append(mu)
        vrs.append(jnp.mean(jnp.square(ht - mu), axis=-1, keepdims=True))
    lane = jax.lax.broadcasted_iota(jnp.int32, h.shape, 1)
    mu_b, var_b = mus[-1], vrs[-1]
    for t in range(TOKEN_NUM - 2, -1, -1):
        sel = lane < (t + 1) * D_MODEL
        mu_b = jnp.where(sel, mus[t], mu_b)
        var_b = jnp.where(sel, vrs[t], var_b)
    hn = (h - mu_b) * jax.lax.rsqrt(var_b + LN_EPS) * p96_ref[1:2, :] + p96_ref[2:3, :]

    # ---- projector2 (single K=TD matmul) -> exact GELU -> final LayerNorm (self.norm) ----
    z = (jnp.dot(hn, w2_ref[...], precision=_HI, preferred_element_type=jnp.float32)
         + p32_ref[0:1, :])
    z = 0.5 * z * (1.0 + jax.lax.erf(z * _SQRT_HALF))
    mu = jnp.mean(z, axis=-1, keepdims=True)
    var = jnp.mean(jnp.square(z - mu), axis=-1, keepdims=True)
    o_ref[...] = (z - mu) * jax.lax.rsqrt(var + LN_EPS) * p32_ref[1:2, :] + p32_ref[2:3, :]


# ------------------------------ parameters ---------------------------------
def init_params(key):
    ks = jax.random.split(key, 6)
    return {
        # fix_mask_with_neighbor: Conv1d(enc_in, enc_in, groups=enc_in, k=3, bias=True)
        "conv_w": 0.3 * jax.random.normal(ks[0], (ENC_IN, 3), jnp.float32),
        "conv_b": 0.1 * jax.random.normal(ks[1], (ENC_IN,), jnp.float32),
        "alpha": jnp.float32(-3.0),                  # torch.tensor(-3.0)
        # projector1: Linear(temp_patch_len, d_model)
        "w1": jax.random.normal(ks[2], (PATCH_LEN, D_MODEL), jnp.float32)
              / jnp.sqrt(jnp.float32(PATCH_LEN)),
        "b1": 0.02 * jax.random.normal(ks[3], (1, D_MODEL), jnp.float32),
        # positional_encoding: zeros(1, temp_token_num, d_model) in __init__
        "pos_enc": jnp.zeros((TOKEN_NUM, D_MODEL), jnp.float32),
        # norm0: LayerNorm(d_model)
        "ln0_g": jnp.ones((1, D_MODEL), jnp.float32),
        "ln0_b": jnp.zeros((1, D_MODEL), jnp.float32),
        # projector2: Linear(d_model*temp_token_num, d_model)
        "w2": jax.random.normal(ks[4], (TD, D_MODEL), jnp.float32)
              / jnp.sqrt(jnp.float32(TD)),
        "b2": 0.02 * jax.random.normal(ks[5], (1, D_MODEL), jnp.float32),
        # self.norm: LayerNorm(d_model)
        "lnf_g": jnp.ones((1, D_MODEL), jnp.float32),
        "lnf_b": jnp.zeros((1, D_MODEL), jnp.float32),
    }


def prepare_params(params, batch_size):
    """One-time inference parameter folding (outside the forward pass):
       * sigmoid(alpha) folded into the depthwise-conv taps; taps packed into one (R,4) array,
       * constant shift matrices [Sp|Sn] and the unfold folded into projector1 -> W1u (L, T*D),
       * projector1 bias merged with positional encoding; norm0 gamma/beta tiled per token,
       * small per-model-dim vectors packed into (3, T*D) and (3, D) constants."""
    a = jax.nn.sigmoid(params["alpha"])
    w, b = params["conv_w"], params["conv_b"]                         # (N,3), (N,)
    taps_nc = jnp.stack([a * w[:, 0], a * w[:, 1] + (1.0 - a),
                         a * w[:, 2], a * b], axis=-1)                # (N, 4)
    taps = jnp.tile(taps_nc, (batch_size, 1))                         # rows ordered (b, n)

    j = jnp.arange(SEQ_LEN)[:, None]
    l = jnp.arange(SEQ_LEN)[None, :]
    sp = (l == j + 1).astype(jnp.float32)                             # x @ sp -> x[:, l-1], 0 at l=0
    sn = (l + 1 == j).astype(jnp.float32)                             # x @ sn -> x[:, l+1], 0 at l=L-1

    w1u = jnp.zeros((SEQ_LEN, TD), jnp.float32)                       # unfold folded into projector1
    for t in range(TOKEN_NUM):
        w1u = w1u.at[t * STRIDE:t * STRIDE + PATCH_LEN,
                     t * D_MODEL:(t + 1) * D_MODEL].set(params["w1"])
    wcat = jnp.concatenate([sp, sn, w1u], axis=1)                     # (L, 2L + TD) = (16, 128)

    bpe = (params["b1"] + params["pos_enc"]).reshape(1, TD)           # b1 + positional_encoding
    g0t = jnp.tile(params["ln0_g"], (1, TOKEN_NUM))
    b0t = jnp.tile(params["ln0_b"], (1, TOKEN_NUM))
    p96 = jnp.concatenate([bpe, g0t, b0t], axis=0)                    # (3, TD)
    p32 = jnp.concatenate([params["b2"], params["lnf_g"], params["lnf_b"]], axis=0)  # (3, D)

    return {"taps": taps, "wcat": wcat, "p96": p96, "w2": params["w2"], "p32": p32}


# ------------------------------ forward ------------------------------------
def _pick_rb(R):
    """Row block: big enough to amortize per-step overhead, >=2 grid steps once R > 64
    (uses both v7x TensorCores), multiple of 32 when blocking (f32 + int8 tiling),
    capped so double-buffered VMEM stays ~2 MiB (safe on v5e/v6e/v7x)."""
    MAX_RB = 4096
    if R <= 64:
        return R
    return min(MAX_RB, max(32, ((R // 2 + 31) // 32) * 32))


def encoder_forward(prep, x, mask):
    Bb, N, L = x.shape
    R = Bb * N
    swin_inter = x                                   # Swin_inter_output.transpose(-1,-2) at return

    # TODO(synk): rem != 0 unfold-padding branch of the reference is not implemented.
    assert (L - PATCH_LEN) % STRIDE == 0 and (L - PATCH_LEN) // STRIDE + 1 == TOKEN_NUM
    assert prep["taps"].shape[0] == R

    x2d = x.reshape(R, L)                            # free metadata reshape (leading dims)
    m2d = mask.reshape(R, L).astype(jnp.int8)        # int8 mask stream: 4x less HBM than f32

    rb = _pick_rb(R)
    grid = (pl.cdiv(R, rb),)                         # remainder-tolerant (last block padded/masked)
    row = lambda i: (i, 0)
    rep = lambda i: (0, 0)

    out = pl.pallas_call(
        _encoder_kernel,
        out_shape=jax.ShapeDtypeStruct((R, D_MODEL), jnp.float32),
        grid=grid,
        in_specs=[
            pl.BlockSpec((rb, L), row),              # x
            pl.BlockSpec((rb, L), row),              # mask (int8)
            pl.BlockSpec((rb, 4), row),              # packed alpha-folded conv taps + bias
            pl.BlockSpec((L, 2 * L + TD), rep),      # [Sp | Sn | W1_unfold]
            pl.BlockSpec((3, TD), rep),              # [b1+pos_enc ; ln0_g ; ln0_b] (token-tiled)
            pl.BlockSpec((TD, D_MODEL), rep),        # projector2 weight
            pl.BlockSpec((3, D_MODEL), rep),         # [b2 ; lnf_g ; lnf_b]
        ],
        out_specs=pl.BlockSpec((rb, D_MODEL), row),
        compiler_params=pltpu.CompilerParams(
            dimension_semantics=("parallel",)),
    )(x2d, m2d, prep["taps"], prep["wcat"], prep["p96"], prep["w2"], prep["p32"])

    x_out = out.reshape(Bb, N, D_MODEL)
    attns = []
    return x_out, attns, swin_inter


# ------------------- pure-JAX reference (unfolded math) ---------------------
def encoder_forward_ref(params, x, mask):
    Bb, N, L = x.shape
    a = jax.nn.sigmoid(params["alpha"])
    xp = jnp.pad(x, ((0, 0), (0, 0), (1, 1)))
    conv = (params["conv_w"][None, :, 0:1] * xp[:, :, 0:L]
            + params["conv_w"][None, :, 1:2] * xp[:, :, 1:L + 1]
            + params["conv_w"][None, :, 2:3] * xp[:, :, 2:L + 2]
            + params["conv_b"][None, :, None])
    x2 = a * conv + (1.0 - a) * x
    xf = jnp.where(mask, x2, x)
    patches = jnp.stack([xf[:, :, t * STRIDE:t * STRIDE + PATCH_LEN]
                         for t in range(TOKEN_NUM)], axis=2)          # (B,N,T,P)
    h = jnp.einsum("bntp,pd->bntd", patches, params["w1"]) + params["b1"] + params["pos_enc"]
    mu = h.mean(-1, keepdims=True)
    var = ((h - mu) ** 2).mean(-1, keepdims=True)
    h = (h - mu) / jnp.sqrt(var + LN_EPS) * params["ln0_g"] + params["ln0_b"]
    hf = h.reshape(Bb, N, TD)
    z = jnp.einsum("bnk,kd->bnd", hf, params["w2"]) + params["b2"]
    z = 0.5 * z * (1.0 + jax.lax.erf(z * _SQRT_HALF))
    mu = z.mean(-1, keepdims=True)
    var = ((z - mu) ** 2).mean(-1, keepdims=True)
    return (z - mu) / jnp.sqrt(var + LN_EPS) * params["lnf_g"] + params["lnf_b"]


# -------------------------------- main --------------------------------------
if __name__ == "__main__":
    key = jax.random.PRNGKey(0)
    k_x, k_m, k_p = jax.random.split(key, 3)

    x = jax.random.normal(k_x, (B, ENC_IN, SEQ_LEN), jnp.float32)
    mask = jax.random.uniform(k_m, (B, ENC_IN, SEQ_LEN)) < 0.3     # bool: True = imputed pos
    params = init_params(k_p)
    prep = prepare_params(params, B)                               # one-time parameter folding

    x_out, attns, swin_inter = encoder_forward(prep, x, mask)
    jax.block_until_ready(x_out)
    jax.block_until_ready(swin_inter)

    assert x_out.shape == (B, ENC_IN, D_MODEL)
    assert swin_inter.shape == (B, ENC_IN, SEQ_LEN)
    assert attns == []

    # precision=HIGHEST on all in-kernel matmuls -> tight agreement with the XLA reference.
    ref = encoder_forward_ref(params, x, mask)
    max_err = float(jnp.max(jnp.abs(x_out - ref)))
    assert max_err < 1e-3, f"mismatch vs reference: {max_err}"

    print("KERNEL_OK")
</pallas_src>

<mosaic_0001>
module attributes {stable_mosaic.version = 11 : i64} {
  func.func @_encoder_kernel(%arg0: i32, %arg1: memref<8x16xf32, #tpu.memory_space<vmem>>, %arg2: memref<8x16xi8, #tpu.memory_space<vmem>>, %arg3: memref<8x4xf32, #tpu.memory_space<vmem>>, %arg4: memref<16x128xf32, #tpu.memory_space<vmem>>, %arg5: memref<3x96xf32, #tpu.memory_space<vmem>>, %arg6: memref<96x32xf32, #tpu.memory_space<vmem>>, %arg7: memref<3x32xf32, #tpu.memory_space<vmem>>, %arg8: memref<8x32xf32, #tpu.memory_space<vmem>>) attributes {dimension_semantics = [#tpu.dimension_semantics<parallel>], iteration_bounds = array<i64: 1>, scalar_prefetch = 0 : i64, scratch_operands = 0 : i64, tpu.core_type = #tpu.core_type<tc>, window_params = [{transform_indices = @transform_0, window_bounds = array<i64: 8, 16>}, {transform_indices = @transform_1, window_bounds = array<i64: 8, 16>}, {transform_indices = @transform_2, window_bounds = array<i64: 8, 4>}, {pipeline_mode = #tpu.pipeline_mode<synchronous>, transform_indices = @transform_3, window_bounds = array<i64: 16, 128>}, {pipeline_mode = #tpu.pipeline_mode<synchronous>, transform_indices = @transform_4, window_bounds = array<i64: 3, 96>}, {pipeline_mode = #tpu.pipeline_mode<synchronous>, transform_indices = @transform_5, window_bounds = array<i64: 96, 32>}, {pipeline_mode = #tpu.pipeline_mode<synchronous>, transform_indices = @transform_6, window_bounds = array<i64: 3, 32>}, {transform_indices = @transform_7, window_bounds = array<i64: 8, 32>}]} {
    %c0 = arith.constant 0 : index
    %c0_0 = arith.constant 0 : index
    %0 = vector.load %arg1[%c0, %c0_0] : memref<8x16xf32, #tpu.memory_space<vmem>>, vector<8x16xf32>
    %c0_1 = arith.constant 0 : index
    %c0_2 = arith.constant 0 : index
    %1 = vector.load %arg2[%c0_1, %c0_2] : memref<8x16xi8, #tpu.memory_space<vmem>>, vector<8x16xi8>
    %2 = arith.sitofp %1 : vector<8x16xi8> to vector<8x16xf32>
    %c0_3 = arith.constant 0 : index
    %c0_4 = arith.constant 0 : index
    %3 = vector.load %arg3[%c0_3, %c0_4] : memref<8x4xf32, #tpu.memory_space<vmem>>, vector<8x4xf32>
    %4 = vector.extract_strided_slice %3 {offsets = [0, 0], sizes = [8, 1], strides = [1, 1]} : vector<8x4xf32> to vector<8x1xf32>
    %5 = vector.extract_strided_slice %3 {offsets = [0, 1], sizes = [8, 1], strides = [1, 1]} : vector<8x4xf32> to vector<8x1xf32>
    %6 = vector.extract_strided_slice %3 {offsets = [0, 2], sizes = [8, 1], strides = [1, 1]} : vector<8x4xf32> to vector<8x1xf32>
    %7 = vector.extract_strided_slice %3 {offsets = [0, 3], sizes = [8, 1], strides = [1, 1]} : vector<8x4xf32> to vector<8x1xf32>
    %c0_5 = arith.constant 0 : index
    %c0_6 = arith.constant 0 : index
    %8 = vector.load %arg4[%c0_5, %c0_6] : memref<16x128xf32, #tpu.memory_space<vmem>>, vector<16x128xf32>
    %9 = vector.extract_strided_slice %8 {offsets = [0, 0], sizes = [16, 32], strides = [1, 1]} : vector<16x128xf32> to vector<16x32xf32>
    %10 = vector.extract_strided_slice %8 {offsets = [0, 32], sizes = [16, 96], strides = [1, 1]} : vector<16x128xf32> to vector<16x96xf32>
    %cst = arith.constant dense<0.000000e+00> : vector<8x32xf32>
    %11 = tpu.matmul %0, %9, %cst {dimension_numbers = #tpu.dot_dimension_numbers<[1], [0], [0], [1], [0, 0, 1, 1], [], []>, precision = #tpu.contract_precision<fp32>} : vector<8x16xf32>, vector<16x32xf32>, vector<8x32xf32> -> vector<8x32xf32>
    %12 = vector.extract_strided_slice %11 {offsets = [0, 0], sizes = [8, 16], strides = [1, 1]} : vector<8x32xf32> to vector<8x16xf32>
    %13 = vector.extract_strided_slice %11 {offsets = [0, 16], sizes = [8, 16], strides = [1, 1]} : vector<8x32xf32> to vector<8x16xf32>
    %14 = vector.broadcast %4 : vector<8x1xf32> to vector<8x16xf32>
    %15 = arith.mulf %14, %12 : vector<8x16xf32>
    %16 = vector.broadcast %5 : vector<8x1xf32> to vector<8x16xf32>
    %17 = arith.mulf %16, %0 : vector<8x16xf32>
    %18 = arith.addf %15, %17 : vector<8x16xf32>
    %19 = vector.broadcast %6 : vector<8x1xf32> to vector<8x16xf32>
    %20 = arith.mulf %19, %13 : vector<8x16xf32>
    %21 = arith.addf %18, %20 : vector<8x16xf32>
    %22 = vector.broadcast %7 : vector<8x1xf32> to vector<8x16xf32>
    %23 = arith.addf %21, %22 : vector<8x16xf32>
    %cst_7 = arith.constant 5.000000e-01 : f32
    %24 = vector.broadcast %cst_7 : f32 to vector<8x16xf32>
    %25 = arith.cmpf ogt, %2, %24 : vector<8x16xf32>
    %26 = arith.select %25, %23, %0 : vector<8x16xi1>, vector<8x16xf32>
    %cst_8 = arith.constant dense<0.000000e+00> : vector<8x96xf32>
    %27 = tpu.matmul %26, %10, %cst_8 {dimension_numbers = #tpu.dot_dimension_numbers<[1], [0], [0], [1], [0, 0, 1, 1], [], []>, precision = #tpu.contract_precision<fp32>} : vector<8x16xf32>, vector<16x96xf32>, vector<8x96xf32> -> vector<8x96xf32>
    %c0_9 = arith.constant 0 : index
    %c0_10 = arith.constant 0 : index
    %28 = vector.load %arg5[%c0_9, %c0_10] : memref<3x96xf32, #tpu.memory_space<vmem>>, vector<1x96xf32>
    %29 = vector.broadcast %28 : vector<1x96xf32> to vector<8x96xf32>
    %30 = arith.addf %27, %29 : vector<8x96xf32>
    %31 = vector.extract_strided_slice %30 {offsets = [0, 0], sizes = [8, 32], strides = [1, 1]} : vector<8x96xf32> to vector<8x32xf32>
    %cst_11 = arith.constant dense<0.000000e+00> : vector<8xf32>
    %32 = vector.multi_reduction <add>, %31, %cst_11 [1] : vector<8x32xf32> to vector<8xf32>
    %33 = vector.shape_cast %32 : vector<8xf32> to vector<8x1xf32>
    %cst_12 = arith.constant 3.200000e+01 : f32
    %34 = vector.broadcast %cst_12 : f32 to vector<8x1xf32>
    %35 = arith.divf %33, %34 : vector<8x1xf32>
    %36 = vector.broadcast %35 : vector<8x1xf32> to vector<8x32xf32>
    %37 = arith.subf %31, %36 : vector<8x32xf32>
    %38 = arith.mulf %37, %37 : vector<8x32xf32>
    %cst_13 = arith.constant dense<0.000000e+00> : vector<8xf32>
    %39 = vector.multi_reduction <add>, %38, %cst_13 [1] : vector<8x32xf32> to vector<8xf32>
    %40 = vector.shape_cast %39 : vector<8xf32> to vector<8x1xf32>
    %cst_14 = arith.constant 3.200000e+01 : f32
    %41 = vector.broadcast %cst_14 : f32 to vector<8x1xf32>
    %42 = arith.divf %40, %41 : vector<8x1xf32>
    %43 = vector.extract_strided_slice %30 {offsets = [0, 32], sizes = [8, 32], strides = [1, 1]} : vector<8x96xf32> to vector<8x32xf32>
    %cst_15 = arith.constant dense<0.000000e+00> : vector<8xf32>
    %44 = vector.multi_reduction <add>, %43, %cst_15 [1] : vector<8x32xf32> to vector<8xf32>
    %45 = vector.shape_cast %44 : vector<8xf32> to vector<8x1xf32>
    %cst_16 = arith.constant 3.200000e+01 : f32
    %46 = vector.broadcast %cst_16 : f32 to vector<8x1xf32>
    %47 = arith.divf %45, %46 : vector<8x1xf32>
    %48 = vector.broadcast %47 : vector<8x1xf32> to vector<8x32xf32>
    %49 = arith.subf %43, %48 : vector<8x32xf32>
    %50 = arith.mulf %49, %49 : vector<8x32xf32>
    %cst_17 = arith.constant dense<0.000000e+00> : vector<8xf32>
    %51 = vector.multi_reduction <add>, %50, %cst_17 [1] : vector<8x32xf32> to vector<8xf32>
    %52 = vector.shape_cast %51 : vector<8xf32> to vector<8x1xf32>
    %cst_18 = arith.constant 3.200000e+01 : f32
    %53 = vector.broadcast %cst_18 : f32 to vector<8x1xf32>
    %54 = arith.divf %52, %53 : vector<8x1xf32>
    %55 = vector.extract_strided_slice %30 {offsets = [0, 64], sizes = [8, 32], strides = [1, 1]} : vector<8x96xf32> to vector<8x32xf32>
    %cst_19 = arith.constant dense<0.000000e+00> : vector<8xf32>
    %56 = vector.multi_reduction <add>, %55, %cst_19 [1] : vector<8x32xf32> to vector<8xf32>
    %57 = vector.shape_cast %56 : vector<8xf32> to vector<8x1xf32>
    %cst_20 = arith.constant 3.200000e+01 : f32
    %58 = vector.broadcast %cst_20 : f32 to vector<8x1xf32>
    %59 = arith.divf %57, %58 : vector<8x1xf32>
    %60 = vector.broadcast %59 : vector<8x1xf32> to vector<8x32xf32>
    %61 = arith.subf %55, %60 : vector<8x32xf32>
    %62 = arith.mulf %61, %61 : vector<8x32xf32>
    %cst_21 = arith.constant dense<0.000000e+00> : vector<8xf32>
    %63 = vector.multi_reduction <add>, %62, %cst_21 [1] : vector<8x32xf32> to vector<8xf32>
    %64 = vector.shape_cast %63 : vector<8xf32> to vector<8x1xf32>
    %cst_22 = arith.constant 3.200000e+01 : f32
    %65 = vector.broadcast %cst_22 : f32 to vector<8x1xf32>
    %66 = arith.divf %64, %65 : vector<8x1xf32>
    %67 = tpu.iota {dimensions = array<i32: 1>} : vector<8x96xi32>
    %c64_i32 = arith.constant 64 : i32
    %68 = vector.broadcast %c64_i32 : i32 to vector<8x96xi32>
    %69 = arith.cmpi slt, %67, %68 : vector<8x96xi32>
    %70 = vector.shape_cast %47 : vector<8x1xf32> to vector<8x1xf32>
    %71 = vector.broadcast %70 : vector<8x1xf32> to vector<8x96xf32>
    %72 = vector.shape_cast %59 : vector<8x1xf32> to vector<8x1xf32>
    %73 = vector.broadcast %72 : vector<8x1xf32> to vector<8x96xf32>
    %74 = arith.select %69, %71, %73 : vector<8x96xi1>, vector<8x96xf32>
    %75 = vector.shape_cast %54 : vector<8x1xf32> to vector<8x1xf32>
    %76 = vector.broadcast %75 : vector<8x1xf32> to vector<8x96xf32>
    %77 = vector.shape_cast %66 : vector<8x1xf32> to vector<8x1xf32>
    %78 = vector.broadcast %77 : vector<8x1xf32> to vector<8x96xf32>
    %79 = arith.select %69, %76, %78 : vector<8x96xi1>, vector<8x96xf32>
    %c32_i32 = arith.constant 32 : i32
    %80 = vector.broadcast %c32_i32 : i32 to vector<8x96xi32>
    %81 = arith.cmpi slt, %67, %80 : vector<8x96xi32>
    %82 = vector.shape_cast %35 : vector<8x1xf32> to vector<8x1xf32>
    %83 = vector.broadcast %82 : vector<8x1xf32> to vector<8x96xf32>
    %84 = arith.select %81, %83, %74 : vector<8x96xi1>, vector<8x96xf32>
    %85 = vector.shape_cast %42 : vector<8x1xf32> to vector<8x1xf32>
    %86 = vector.broadcast %85 : vector<8x1xf32> to vector<8x96xf32>
    %87 = arith.select %81, %86, %79 : vector<8x96xi1>, vector<8x96xf32>
    %88 = arith.subf %30, %84 : vector<8x96xf32>
    %cst_23 = arith.constant 9.99999974E-6 : f32
    %89 = vector.broadcast %cst_23 : f32 to vector<8x96xf32>
    %90 = arith.addf %87, %89 : vector<8x96xf32>
    %91 = math.rsqrt %90 : vector<8x96xf32>
    %92 = arith.mulf %88, %91 : vector<8x96xf32>
    %c1 = arith.constant 1 : index
    %c0_24 = arith.constant 0 : index
    %93 = vector.load %arg5[%c1, %c0_24] : memref<3x96xf32, #tpu.memory_space<vmem>>, vector<1x96xf32>
    %94 = vector.broadcast %93 : vector<1x96xf32> to vector<8x96xf32>
    %95 = arith.mulf %92, %94 : vector<8x96xf32>
    %c2 = arith.constant 2 : index
    %c0_25 = arith.constant 0 : index
    %96 = vector.load %arg5[%c2, %c0_25] : memref<3x96xf32, #tpu.memory_space<vmem>>, vector<1x96xf32>
    %97 = vector.broadcast %96 : vector<1x96xf32> to vector<8x96xf32>
    %98 = arith.addf %95, %97 : vector<8x96xf32>
    %c0_26 = arith.constant 0 : index
    %c0_27 = arith.constant 0 : index
    %99 = vector.load %arg6[%c0_26, %c0_27] : memref<96x32xf32, #tpu.memory_space<vmem>>, vector<96x32xf32>
    %cst_28 = arith.constant dense<0.000000e+00> : vector<8x32xf32>
    %100 = tpu.matmul %98, %99, %cst_28 {dimension_numbers = #tpu.dot_dimension_numbers<[1], [0], [0], [1], [0, 0, 1, 1], [], []>, precision = #tpu.contract_precision<fp32>} : vector<8x96xf32>, vector<96x32xf32>, vector<8x32xf32> -> vector<8x32xf32>
    %c0_29 = arith.constant 0 : index
    %c0_30 = arith.constant 0 : index
    %101 = vector.load %arg7[%c0_29, %c0_30] : memref<3x32xf32, #tpu.memory_space<vmem>>, vector<1x32xf32>
    %102 = vector.broadcast %101 : vector<1x32xf32> to vector<8x32xf32>
    %103 = arith.addf %100, %102 : vector<8x32xf32>
    %cst_31 = arith.constant 5.000000e-01 : f32
    %104 = vector.broadcast %cst_31 : f32 to vector<8x32xf32>
    %105 = arith.mulf %104, %103 : vector<8x32xf32>
    %cst_32 = arith.constant 0.707106769 : f32
    %106 = vector.broadcast %cst_32 : f32 to vector<8x32xf32>
    %107 = arith.mulf %103, %106 : vector<8x32xf32>
    %108 = math.erf %107 : vector<8x32xf32>
    %cst_33 = arith.constant 1.000000e+00 : f32
    %109 = vector.broadcast %cst_33 : f32 to vector<8x32xf32>
    %110 = arith.addf %109, %108 : vector<8x32xf32>
    %111 = arith.mulf %105, %110 : vector<8x32xf32>
    %cst_34 = arith.constant dense<0.000000e+00> : vector<8xf32>
    %112 = vector.multi_reduction <add>, %111, %cst_34 [1] : vector<8x32xf32> to vector<8xf32>
    %113 = vector.shape_cast %112 : vector<8xf32> to vector<8x1xf32>
    %cst_35 = arith.constant 3.200000e+01 : f32
    %114 = vector.broadcast %cst_35 : f32 to vector<8x1xf32>
    %115 = arith.divf %113, %114 : vector<8x1xf32>
    %116 = vector.broadcast %115 : vector<8x1xf32> to vector<8x32xf32>
    %117 = arith.subf %111, %116 : vector<8x32xf32>
    %118 = arith.mulf %117, %117 : vector<8x32xf32>
    %cst_36 = arith.constant dense<0.000000e+00> : vector<8xf32>
    %119 = vector.multi_reduction <add>, %118, %cst_36 [1] : vector<8x32xf32> to vector<8xf32>
    %120 = vector.shape_cast %119 : vector<8xf32> to vector<8x1xf32>
    %cst_37 = arith.constant 3.200000e+01 : f32
    %121 = vector.broadcast %cst_37 : f32 to vector<8x1xf32>
    %122 = arith.divf %120, %121 : vector<8x1xf32>
    %123 = vector.broadcast %115 : vector<8x1xf32> to vector<8x32xf32>
    %124 = arith.subf %111, %123 : vector<8x32xf32>
    %cst_38 = arith.constant 9.99999974E-6 : f32
    %125 = vector.broadcast %cst_38 : f32 to vector<8x1xf32>
    %126 = arith.addf %122, %125 : vector<8x1xf32>
    %127 = math.rsqrt %126 : vector<8x1xf32>
    %128 = vector.broadcast %127 : vector<8x1xf32> to vector<8x32xf32>
    %129 = arith.mulf %124, %128 : vector<8x32xf32>
    %c1_39 = arith.constant 1 : index
    %c0_40 = arith.constant 0 : index
    %130 = vector.load %arg7[%c1_39, %c0_40] : memref<3x32xf32, #tpu.memory_space<vmem>>, vector<1x32xf32>
    %131 = vector.broadcast %130 : vector<1x32xf32> to vector<8x32xf32>
    %132 = arith.mulf %129, %131 : vector<8x32xf32>
    %c2_41 = arith.constant 2 : index
    %c0_42 = arith.constant 0 : index
    %133 = vector.load %arg7[%c2_41, %c0_42] : memref<3x32xf32, #tpu.memory_space<vmem>>, vector<1x32xf32>
    %134 = vector.broadcast %133 : vector<1x32xf32> to vector<8x32xf32>
    %135 = arith.addf %132, %134 : vector<8x32xf32>
    %c0_43 = arith.constant 0 : index
    %c0_44 = arith.constant 0 : index
    %136 = vector.load %arg8[%c0_43, %c0_44] : memref<8x32xf32, #tpu.memory_space<vmem>>, vector<8x32xf32>
    tpu.vector_store %arg8[%c0_43, %c0_44], %135 {strides = array<i32>} : memref<8x32xf32, #tpu.memory_space<vmem>>, vector<8x32xf32>,
    return
  }
  func.func @transform_0(%arg0: i32) -> (i32, i32) {
    %c0_i32 = arith.constant 0 : i32
    %c0_i32_0 = arith.constant 0 : i32
    return %arg0, %c0_i32 : i32, i32
  }
  func.func @transform_1(%arg0: i32) -> (i32, i32) {
    %c0_i32 = arith.constant 0 : i32
    %c0_i32_0 = arith.constant 0 : i32
    return %arg0, %c0_i32 : i32, i32
  }
  func.func @transform_2(%arg0: i32) -> (i32, i32) {
    %c0_i32 = arith.constant 0 : i32
    %c0_i32_0 = arith.constant 0 : i32
    return %arg0, %c0_i32 : i32, i32
  }
  func.func @transform_3(%arg0: i32) -> (i32, i32) {
    %c0_i32 = arith.constant 0 : i32
    %c0_i32_0 = arith.constant 0 : i32
    %c0_i32_1 = arith.constant 0 : i32
    return %c0_i32, %c0_i32_0 : i32, i32
  }
  func.func @transform_4(%arg0: i32) -> (i32, i32) {
    %c0_i32 = arith.constant 0 : i32
    %c0_i32_0 = arith.constant 0 : i32
    %c0_i32_1 = arith.constant 0 : i32
    return %c0_i32, %c0_i32_0 : i32, i32
  }
  func.func @transform_5(%arg0: i32) -> (i32, i32) {
    %c0_i32 = arith.constant 0 : i32
    %c0_i32_0 = arith.constant 0 : i32
    %c0_i32_1 = arith.constant 0 : i32
    return %c0_i32, %c0_i32_0 : i32, i32
  }
  func.func @transform_6(%arg0: i32) -> (i32, i32) {
    %c0_i32 = arith.constant 0 : i32
    %c0_i32_0 = arith.constant 0 : i32
    %c0_i32_1 = arith.constant 0 : i32
    return %c0_i32, %c0_i32_0 : i32, i32
  }
  func.func @transform_7(%arg0: i32) -> (i32, i32) {
    %c0_i32 = arith.constant 0 : i32
    %c0_i32_0 = arith.constant 0 : i32
    return %arg0, %c0_i32 : i32, i32
  }
}

</mosaic_0001>

<bundles_post_ra>
// kernel: tpu_custom_call.1
= control target key start
LH: loop header
LB: loop body
LE: loop exit
PB: predicated region body
PF: predicated region fallthrough
CT: control target
= control target key end

     0   :  { %vm34_vm0 = vcmask 130048   ;;  %v929_v6 = vmov 2   ;;  %v930_v8 = vmov 1   ;;  %s1245_s0 = inlined_call_operand.vmem [shape: f32[8,16], index: 0, kind: input, shape index: {}]   ;;  %s1246_s1 = inlined_call_operand.vmem [shape: s8[8,16], index: 1, kind: input, shape index: {}]   ;;  %s1247_s2 = inlined_call_operand.vmem [shape: f32[8,4], index: 2, kind: input, shape index: {}]   ;;  %s1248_s3 = inlined_call_operand.vmem [shape: f32[16,128], index: 3, kind: input, shape index: {}]   ;;  %s1249_s4 = inlined_call_operand.vmem [shape: f32[3,96], index: 4, kind: input, shape index: {}]   ;;  %s1250_s5 = inlined_call_operand.vmem [shape: f32[96,32], index: 5, kind: input, shape index: {}]   ;;  %s1251_s6 = inlined_call_operand.vmem [shape: f32[3,32], index: 6, kind: input, shape index: {}]   ;;  %s1252_s7 = inlined_call_operand.hbm [shape: f32[8,32], index: 7, kind: output, shape index: {}]  }
   0x1   :  { %v33_v0 = vld [vmem:[%s1248_s3 + $0x8] sm:$0xff]  ;;  %v984_v1 = vld [vmem:[%s1248_s3] sm:$0xff]  ;;  %884 = vset.pattern.permute.xlu0 %v929_v6  ;;  %886 = vset.pattern.permute.xlu1 %v930_v8 }
   0x2   :  { %v989_v2 = vld [vmem:[%s1245_s0] sm:$0xff]  ;;  %v52_v3 = vand.u32 4294901760, %v33_v0  ;;  %v54_v4 = vand.u32 4294901760, %v984_v1 }
   0x3   :  { %v36_v5 = vsel %vm34_vm0, %v989_v2, 0  ;;  %v31_v7 = vld [vmem:[%s1247_s2] sm:$0xff] }
   0x4   :  { %v56_v9 = vand.u32 4294901760, %v36_v5  ;;  %210 = vperm.xlu0 %884, %v31_v7   ;;  %204 = vperm.xlu1 %886, %v31_v7   ;;  %v80_v10 = vsub.f32 %v33_v0, %v52_v3  ;;  %v86_v11 = vsub.f32 %v984_v1, %v54_v4 }
   0x5   :  { %53 = vmatpush.msra.mxu2 %v52_v3  ;;  %189 = vmatpush.msra.mxu1 %v52_v3 }
   0x6   :  { %12 = vsyncpa [#allocation3], 0  ;;  %v57_v12 = vsub.f32 %v36_v5, %v56_v9  ;;  %v81_v13 = vand.u32 4294901760, %v80_v10  ;;  %v87_v14 = vand.u32 4294901760, %v86_v11  ;;  %v931_v22 = vmov 0   ;;  %s933_s0 = smov 96  }
   0x7   :  { %55 = vmatpush.msra.mxu2 %v54_v4  ;;  %191 = vmatpush.msra.mxu1 %v54_v4  ;;  %v932_v23 = vmov 3   ;;  %s934_s2 = smov 112   ;;  %v28_v44 = vld [vmem:[%s1246_s1] sm:$0x3]  ;;  %s935_s11 = smov 64   ;;  %vm398_vm2 = vcmask 261120  }
   0x8   :  { %v58_v15 = vand.u32 4294901760, %v57_v12  ;;  %193 = vmatmul.f32.vlgmr.msra.gmra.mxu1 %v56_v9  ;;  %v82_v16 = vsub.f32 %v80_v10, %v81_v13  ;;  %v88_v17 = vsub.f32 %v86_v11, %v87_v14  ;;  %164 = vmatpush.msra.mxu0 %v81_v13  ;;  %v29_v47 = vunpack.c.0.s8 %v28_v44  ;;  %s937_s17 = smov [#allocation2]   ;;  %s865_s21 = sshll.u32 %s1252_s7, 4  ;;  %s866_s21 = int_to_ptr.hbm [resolvable:$true] %s865_s21 }
   0x9   :  { %112 = vmatpush.msrb.mxu2 %v80_v10  ;;  %887 = vset.pattern.permute.xlu2 %v932_v23  ;;  %vm492_vm9 = vcmask 785408   ;;  %s863_s18 = sshll.u32 %s937_s17, 4  ;;  %s864_s18 = int_to_ptr.vmem [resolvable:$true] %s863_s18 }
   0xa   :  { %v59_v18 = vsub.f32 %v57_v12, %v58_v15  ;;  %v83_v19 = vand.u32 4294901760, %v82_v16  ;;  %v89_v20 = vand.u32 4294901760, %v88_v17  ;;  %168 = vmatpush.msra.mxu0 %v87_v14  ;;  %220 = vperm.xlu2 %887, %v31_v7   ;;  %v30_v50 = vcvt.s32.f32 %v29_v47 }
   0xb   :  { %115 = vmatpush.msrb.mxu2 %v86_v11  ;;  %170 = vmatmul.f32.vlgmr.msra.gmra.mxu0 %v56_v9 }
   0xc   :  { %v60_v21 = vand.u32 4294901760, %v59_v18  ;;  %885 = vset.pattern.permute.xlu0 %v931_v22  ;;  %84 = vmatpush.msra.mxu3 %v83_v19  ;;  %vm224_vm1 = vcmp.gt.f32.partialorder %v30_v50, 0.5  ;;  %v936_v22 = vmov 32.0   ;;  %v488_v50 = vld [vmem:[%s1250_s5 + $0x50] sm:$0xff] }
   0xd   :  { %199 = vperm.xlu0 %885, %v31_v7   ;;  %895 = vrcp.f32 %v936_v22 }
   0xe   :  { %61 = vmatmul.f32.vlgmr.msra.gmra.mxu2 %v60_v21  ;;  %90 = vmatpush.msra.mxu3 %v89_v20 }
   0xf   :  { %92 = vmatmul.f32.vlgmr.msra.gmra.mxu3 %v56_v9 }
  0x10   :  { %137 = vmatpush.msrb.mxu3 %v52_v3 }
  0x12   :  { %139 = vmatpush.msrb.mxu3 %v54_v4  ;;  %232 = vrot.lane.b32.xlu2 %v33_v0, %s933_s0  ;;  %v889_v4 = vld [vmem:[%s1249_s4] ss:$0 sm:$0xff] }
  0x15   :  { %888 = vset.pattern.permute.xlu0 %v932_v23  ;;  %v896_v23 = vpop.eup %895 }
  0x16   :  { %118 = vmatmul.f32.vlgmr.msrb.gmra.mxu2 %v57_v12  ;;  %vm407_vm3 = vweird.f32 %v896_v23 }
  0x17   :  { %143 = vmatmul.f32.vlgmr.msrb.gmra.mxu3 %v58_v15 }
  0x64   :  { %v221_v37 = vpop.permute.xlu2 %220 }
  0x6c   :  { %v233_v38 = vpop.permute.xlu2 %232 }
  0x6d   :  { %v253_v39 = vand.u32 4294901760, %v233_v38 }
  0x6f   :  { %v281_v40 = vsub.f32 %v233_v38, %v253_v39  ;;  %254 = vmatpush.msra.mxu2 %v253_v39  ;;  %338 = vmatpush.msrb.mxu1 %v253_v39 }
  0x71   :  { %v282_v41 = vand.u32 4294901760, %v281_v40  ;;  %313 = vmatpush.msrb.mxu0 %v281_v40 }
  0x73   :  { %v283_v42 = vsub.f32 %v281_v40, %v282_v41 }
  0x75   :  { %v284_v43 = vand.u32 4294901760, %v283_v42 }
  0x76   :  { %v211_v35 = vpop.permute.xlu0 %210  ;;  %v205_v45 = vpop.permute.xlu1 %204 }
  0x77   :  { %285 = vmatpush.msra.mxu3 %v284_v43  ;;  %v207_v48 = vmul.f32 %v205_v45, %v989_v2 }
  0x7f   :  { %v200_v46 = vpop.permute.xlu0 %199 }
  0x85   :  { %v194_v32 = vpop.f32.mrf.mxu1 }
  0x88   :  { %v171_v30 = vpop.f32.mrf.mxu0 }
  0x91   :  { %v62_v24 = vpop.f32.mrf.mxu2 }
  0x92   :  { %v93_v25 = vpop.f32.mrf.mxu3 }
  0x93   :  { %v94_v26 = vadd.f32 %v93_v25, %v62_v24  ;;  %v403_v24 = vmul.f32 32.0, %v896_v23 }
  0x95   :  { %v404_v25 = vsub.f32 1.0, %v403_v24  ;;  %v481_v24 = vld [vmem:[%s1250_s5 + $0x18] sm:$0xff] }
  0x99   :  { %v119_v27 = vpop.f32.mrf.mxu2 }
  0x9a   :  { %v120_v28 = vadd.f32 %v119_v27, %v94_v26  ;;  %v144_v29 = vpop.f32.mrf.mxu3  ;;  %v405_v26 = vmul.f32 %v896_v23, %v404_v25 }
  0x9c   :  { %v145_v31 = vadd.f32 %v144_v29, %v120_v28  ;;  %v406_v27 = vadd.f32 %v896_v23, %v405_v26 }
  0x9e   :  { %v172_v33 = vadd.f32 %v171_v30, %v145_v31  ;;  %v1020_v28 = vsel %vm407_vm3, %v896_v23, %v406_v27 }
  0xa0   :  { %v195_v34 = vadd.f32 %v194_v32, %v172_v33  ;;  %v451_v33 = vlaneseq }
  0xa2   :  { %v213_v36 = vmul.f32 %v211_v35, %v195_v34  ;;  %v202_v49 = vmul.f32 %v200_v46, %v195_v34  ;;  %v1025_v34 = vand.u32 127, %v451_v33 }
  0xa4   :  { %215 = vrot.lane.b32.xlu1 %v213_v36, %s934_s2  ;;  %v208_v51 = vadd.f32 %v207_v48, %v202_v49  ;;  %vm453_vm4 = vcmp.lt.s32.totalorder %v1025_v34, 64  ;;  %v489_v49 = vld [vmem:[%s1250_s5 + $0x58] sm:$0xff]  ;;  %vm456_vm5 = vcmp.lt.s32.totalorder %v1025_v34, 32 }
  0xac   :  { %230 = vrot.lane.b32.xlu1 %v984_v1, %s933_s0 }
 0x116   :  { %v216_v52 = vpop.permute.xlu1 %215 }
 0x117   :  { %v218_v53 = vadd.f32 %v216_v52, %v208_v51  ;;  %v487_v51 = vld [vmem:[%s1250_s5 + $0x48] sm:$0xff]  ;;  %v1052_v52 = vand.u32 4294901760, %v489_v49 }
 0x119   :  { %v223_v54 = vadd.f32 %v221_v37, %v218_v53  ;;  %v1054_v53 = vand.u32 4294901760, %v488_v50 }
 0x11b   :  { %v225_v55 = vsel %vm224_vm1, %v223_v54, %v989_v2  ;;  %v1056_v54 = vand.u32 4294901760, %v487_v51 }
 0x11c   :  { %v237_v56 = vsel %vm34_vm0, %v225_v55, 0  ;;  %v1059_v55 = vsub.f32 %v489_v49, %v1052_v52 }
 0x11d   :  { %v257_v57 = vand.u32 4294901760, %v237_v56 }
 0x11e   :  { %v231_v58 = vpop.permute.xlu1 %230 }
 0x11f   :  { %v255_v59 = vand.u32 4294901760, %v231_v58  ;;  %v258_v60 = vsub.f32 %v237_v56, %v257_v57  ;;  %v1062_v56 = vsub.f32 %v488_v50, %v1054_v53 }
 0x121   :  { %v287_v61 = vsub.f32 %v231_v58, %v255_v59  ;;  %256 = vmatpush.msra.mxu2 %v255_v59  ;;  %340 = vmatpush.msrb.mxu1 %v255_v59  ;;  %v259_v62 = vand.u32 4294901760, %v258_v60  ;;  %v539_v58 = vand.u32 4294901760, %v1059_v55 }
 0x123   :  { %365 = vmatpush.msrb.mxu2 %v282_v41  ;;  %316 = vmatpush.msrb.mxu0 %v287_v61  ;;  %v260_v63 = vsub.f32 %v258_v60, %v259_v62  ;;  %v288_v0 = vand.u32 4294901760, %v287_v61 }
 0x124   :  { %344 = vmatmul.f32.vlgmr.msrb.gmra.mxu1 %v259_v62  ;;  %319 = vmatmul.f32.vlgmr.msrb.gmra.mxu0 %v258_v60 }
 0x125   :  { %v261_v1 = vand.u32 4294901760, %v260_v63  ;;  %369 = vmatpush.msrb.mxu2 %v288_v0  ;;  %v289_v3 = vsub.f32 %v287_v61, %v288_v0  ;;  %501 = vmatpush.msra.mxu0 %v1052_v52  ;;  %v540_v61 = vsub.f32 %v1059_v55, %v539_v58 }
 0x127   :  { %262 = vmatmul.f32.vlgmr.msra.gmra.mxu2 %v261_v1  ;;  %v290_v2 = vand.u32 4294901760, %v289_v3  ;;  %503 = vmatpush.msra.mxu0 %v1054_v53  ;;  %v541_v0 = vand.u32 4294901760, %v540_v61 }
 0x128   :  { %620 = vmatpush.msra.mxu2 %v1059_v55 }
 0x129   :  { %291 = vmatpush.msra.mxu3 %v290_v2  ;;  %505 = vmatpush.msra.mxu0 %v1056_v54  ;;  %v486_v2 = vld [vmem:[%s1250_s5 + $0x40] sm:$0xff] }
 0x12a   :  { %293 = vmatmul.f32.vlgmr.msra.gmra.mxu3 %v257_v57  ;;  %623 = vmatpush.msra.mxu2 %v1062_v56 }
 0x12b   :  { %390 = vmatpush.msrb.mxu3 %v253_v39  ;;  %542 = vmatpush.msra.mxu1 %v541_v0 }
 0x12d   :  { %392 = vmatpush.msrb.mxu3 %v255_v59  ;;  %v545_v59 = vand.u32 4294901760, %v1062_v56 }
 0x12f   :  { %371 = vmatmul.f32.vlgmr.msrb.gmra.mxu2 %v257_v57  ;;  %665 = vmatpush.msra.mxu3 %v1052_v52  ;;  %v546_v62 = vsub.f32 %v1062_v56, %v545_v59 }
 0x131   :  { %667 = vmatpush.msra.mxu3 %v1054_v53  ;;  %v547_v1 = vand.u32 4294901760, %v546_v62 }
 0x132   :  { %394 = vmatmul.f32.vlgmr.msrb.gmra.mxu3 %v257_v57  ;;  %v1065_v57 = vsub.f32 %v487_v51, %v1056_v54 }
 0x133   :  { %669 = vmatpush.msra.mxu3 %v1056_v54  ;;  %548 = vmatpush.msra.mxu1 %v547_v1 }
 0x134   :  { %v551_v60 = vand.u32 4294901760, %v1065_v57  ;;  %626 = vmatpush.msra.mxu2 %v1065_v57 }
 0x136   :  { %v552_v63 = vsub.f32 %v1065_v57, %v551_v60 }
 0x138   :  { %v553_v3 = vand.u32 4294901760, %v552_v63 }
 0x13a   :  { %554 = vmatpush.msra.mxu1 %v553_v3 }
 0x1a1   :  { %v320_v9 = vpop.f32.mrf.mxu0  ;;  %v345_v11 = vpop.f32.mrf.mxu1 }
 0x1aa   :  { %v263_v5 = vpop.f32.mrf.mxu2 }
 0x1ab   :  { %v264_v6 = vadd.f32 %v889_v4, %v263_v5  ;;  %v1091_v4 = vand.u32 4294901760, %v486_v2  ;;  %v485_v5 = vld [vmem:[%s1250_s5 + $0x38] sm:$0xff] }
 0x1ad   :  { %v294_v7 = vpop.f32.mrf.mxu3  ;;  %507 = vmatpush.msra.mxu0 %v1091_v4  ;;  %671 = vmatpush.msra.mxu3 %v1091_v4 }
 0x1ae   :  { %v295_v8 = vadd.f32 %v294_v7, %v264_v6  ;;  %v1097_v6 = vsub.f32 %v486_v2, %v1091_v4  ;;  %v1099_v7 = vand.u32 4294901760, %v485_v5 }
 0x1b0   :  { %v321_v10 = vadd.f32 %v320_v9, %v295_v8  ;;  %v484_v8 = vld [vmem:[%s1250_s5 + $0x30] sm:$0xff]  ;;  %v557_v9 = vand.u32 4294901760, %v1097_v6  ;;  %509 = vmatpush.msra.mxu0 %v1099_v7  ;;  %629 = vmatpush.msra.mxu2 %v1097_v6 }
 0x1b1   :  { %673 = vmatpush.msra.mxu3 %v1099_v7 }
 0x1b2   :  { %v346_v12 = vadd.f32 %v345_v11, %v321_v10  ;;  %v372_v13 = vpop.f32.mrf.mxu2  ;;  %v1108_v10 = vsub.f32 %v485_v5, %v1099_v7  ;;  %v1110_v11 = vand.u32 4294901760, %v484_v8 }
 0x1b4   :  { %v373_v14 = vadd.f32 %v372_v13, %v346_v12  ;;  %v483_v12 = vld [vmem:[%s1250_s5 + $0x28] sm:$0xff]  ;;  %v558_v13 = vsub.f32 %v1097_v6, %v557_v9  ;;  %511 = vmatpush.msra.mxu0 %v1110_v11  ;;  %632 = vmatpush.msra.mxu2 %v1108_v10 }
 0x1b5   :  { %v395_v15 = vpop.f32.mrf.mxu3  ;;  %675 = vmatpush.msra.mxu3 %v1110_v11 }
 0x1b6   :  { %v1010_v16 = vadd.f32 %v395_v15, %v373_v14  ;;  %v563_v14 = vand.u32 4294901760, %v1108_v10  ;;  %v1123_v15 = vsub.f32 %v484_v8, %v1110_v11 }
 0x1b8   :  { %434 = vrot.lane.b32.xlu0 %v1010_v16, %s935_s11  ;;  %417 = vrot.lane.b32.xlu2 %v1010_v16, %s933_s0  ;;  %v399_v17 = vsel %vm398_vm2, %v1010_v16, 0.0 }
 0x1b9   :  { %635 = vmatpush.msra.mxu2 %v1123_v15 }
 0x1e2   :  { %400 = vadd.xlane.f32.xlu0 %v399_v17  ;;  %v1125_v17 = vand.u32 4294901760, %v483_v12 }
 0x1e4   :  { %v1138_v22 = vsub.f32 %v483_v12, %v1125_v17  ;;  %513 = vmatpush.msra.mxu0 %v1125_v17  ;;  %677 = vmatpush.msra.mxu3 %v1125_v17 }
 0x1e6   :  { %v575_v27 = vand.u32 4294901760, %v1138_v22  ;;  %638 = vmatpush.msra.mxu2 %v1138_v22 }
 0x1e8   :  { %v576_v33 = vsub.f32 %v1138_v22, %v575_v27 }
 0x212   :  { %v418_v18 = vpop.permute.xlu2 %417 }
 0x213   :  { %v420_v19 = vsel %vm398_vm2, %v418_v18, 0.0  ;;  %v482_v18 = vld [vmem:[%s1250_s5 + $0x20] sm:$0xff] }
 0x214   :  { %421 = vadd.xlane.f32.xlu1 %v420_v19  ;;  %v559_v19 = vand.u32 4294901760, %v558_v13  ;;  %v1142_v23 = vand.u32 4294901760, %v482_v18 }
 0x216   :  { %560 = vmatpush.msra.mxu1 %v559_v19  ;;  %515 = vmatpush.msra.mxu0 %v1142_v23 }
 0x217   :  { %679 = vmatpush.msra.mxu3 %v1142_v23 }
 0x22a   :  { %v435_v20 = vpop.permute.xlu0 %434 }
 0x22b   :  { %v437_v21 = vsel %vm398_vm2, %v435_v20, 0.0  ;;  %v564_v20 = vsub.f32 %v1108_v10, %v563_v14 }
 0x22c   :  { %438 = vadd.xlane.f32.xlu2 %v437_v21  ;;  %v569_v21 = vand.u32 4294901760, %v1123_v15 }
 0x22d   :  { %v565_v25 = vand.u32 4294901760, %v564_v20 }
 0x22e   :  { %v570_v26 = vsub.f32 %v1123_v15, %v569_v21 }
 0x22f   :  { %566 = vmatpush.msra.mxu1 %v565_v25 }
 0x255   :  { %v401_v40 = vpop.xlane.xlu0 %400 }
 0x256   :  { %v1036_v41 = vmul.f32 %v1020_v28, %v401_v40  ;;  %v577_v40 = vand.u32 4294901760, %v576_v33 }
 0x258   :  { %v410_v42 = vsub.f32 %v1010_v16, %v1036_v41 }
 0x25a   :  { %v411_v43 = vmul.f32 %v410_v42, %v410_v42 }
 0x25c   :  { %v412_v44 = vsel %vm398_vm2, %v411_v43, 0.0 }
 0x287   :  { %v422_v29 = vpop.xlane.xlu1 %421 }
 0x288   :  { %v423_v30 = vmul.f32 %v422_v29, %v1020_v28  ;;  %v1152_v29 = vand.u32 4294901760, %v481_v24 }
 0x28a   :  { %v424_v31 = vsub.f32 %v1010_v16, %v423_v30  ;;  %517 = vmatpush.msra.mxu0 %v1152_v29  ;;  %681 = vmatpush.msra.mxu3 %v1152_v29 }
 0x28c   :  { %v425_v32 = vmul.f32 %v424_v31, %v424_v31  ;;  %v480_v31 = vld [vmem:[%s1250_s5 + $0x10] sm:$0xff] }
 0x28e   :  { %427 = vrot.lane.b32.xlu2 %v425_v32, %s933_s0  ;;  %v571_v32 = vand.u32 4294901760, %v570_v26 }
 0x290   :  { %572 = vmatpush.msra.mxu1 %v571_v32 }
 0x292   :  { %578 = vmatpush.msra.mxu1 %v577_v40 }
 0x29f   :  { %v439_v35 = vpop.xlane.xlu2 %438 }
 0x2a0   :  { %v440_v36 = vmul.f32 %v439_v35, %v1020_v28  ;;  %v586_v35 = vsub.f32 %v481_v24, %v1152_v29  ;;  %v892_v24 = vld [vmem:[%s1251_s6] ss:$0 sm:$0xff] }
 0x2a2   :  { %v441_v37 = vsub.f32 %v1010_v16, %v440_v36  ;;  %v1032_v38 = vsel %vm453_vm4, %v423_v30, %v440_v36  ;;  %v1156_v30 = vsub.f32 %v482_v18, %v1142_v23  ;;  %v1167_v36 = vand.u32 4294901760, %v480_v31  ;;  %v891_v18 = vld [vmem:[%s1249_s4 + $0x2] ss:$0 sm:$0xff] }
 0x2a3   :  { %v587_v42 = vand.u32 4294901760, %v586_v35  ;;  %v457_v34 = vsel %vm456_vm5, %v1036_v41, %v1032_v38 }
 0x2a4   :  { %v442_v39 = vmul.f32 %v441_v37, %v441_v37  ;;  %v581_v37 = vand.u32 4294901760, %v1156_v30  ;;  %641 = vmatpush.msra.mxu2 %v1156_v30  ;;  %v592_v43 = vsub.f32 %v480_v31, %v1167_v36  ;;  %519 = vmatpush.msra.mxu0 %v1167_v36  ;;  %v459_v13 = vsub.f32 %v1010_v16, %v457_v34 }
 0x2a5   :  { %683 = vmatpush.msra.mxu3 %v1167_v36 }
 0x2a6   :  { %444 = vrot.lane.b32.xlu1 %v442_v39, %s935_s11  ;;  %v479_v39 = vld [vmem:[%s1250_s5 + $0x8] sm:$0xff]  ;;  %644 = vmatpush.msra.mxu2 %v586_v35 }
 0x2a8   :  { %647 = vmatpush.msra.mxu2 %v592_v43 }
 0x2b7   :  { %413 = vadd.xlane.f32.xlu2 %v412_v44  ;;  %v1176_v44 = vand.u32 4294901760, %v479_v39 }
 0x2b9   :  { %v598_v49 = vsub.f32 %v479_v39, %v1176_v44  ;;  %521 = vmatpush.msra.mxu0 %v1176_v44  ;;  %685 = vmatpush.msra.mxu3 %v1176_v44 }
 0x2bb   :  { %v599_v63 = vand.u32 4294901760, %v598_v49  ;;  %650 = vmatpush.msra.mxu2 %v598_v49 }
 0x2bd   :  { %v600_v3 = vsub.f32 %v598_v49, %v599_v63 }
 0x2bf   :  { %v601_v5 = vand.u32 4294901760, %v600_v3 }
 0x2e8   :  { %v428_v45 = vpop.permute.xlu2 %427 }
 0x2e9   :  { %v430_v46 = vsel %vm398_vm2, %v428_v45, 0.0  ;;  %v582_v45 = vsub.f32 %v1156_v30, %v581_v37 }
 0x2ea   :  { %431 = vadd.xlane.f32.xlu0 %v430_v46  ;;  %v478_v46 = vld [vmem:[%s1250_s5] sm:$0xff] }
 0x2eb   :  { %v522_v50 = vand.u32 4294901760, %v478_v46  ;;  %v583_v51 = vand.u32 4294901760, %v582_v45 }
 0x2ed   :  { %v604_v0 = vsub.f32 %v478_v46, %v522_v50  ;;  %584 = vmatpush.msra.mxu1 %v583_v51  ;;  %523 = vmatpush.msra.mxu0 %v522_v50 }
 0x2ee   :  { %687 = vmatpush.msra.mxu3 %v522_v50 }
 0x2ef   :  { %v605_v2 = vand.u32 4294901760, %v604_v0  ;;  %702 = vmatpush.msrb.mxu0 %v539_v58  ;;  %653 = vmatpush.msra.mxu2 %v604_v0 }
 0x2f1   :  { %v606_v8 = vsub.f32 %v604_v0, %v605_v2  ;;  %706 = vmatpush.msrb.mxu0 %v545_v59 }
 0x2f3   :  { %v607_v12 = vand.u32 4294901760, %v606_v8  ;;  %710 = vmatpush.msrb.mxu0 %v551_v60 }
 0x2f5   :  { %714 = vmatpush.msrb.mxu0 %v557_v9 }
 0x2f7   :  { %718 = vmatpush.msrb.mxu0 %v563_v14  ;;  %v890_v14 = vld [vmem:[%s1249_s4 + $0x1] ss:$0 sm:$0xff] }
 0x2f9   :  { %722 = vmatpush.msrb.mxu0 %v569_v21 }
 0x2fb   :  { %726 = vmatpush.msrb.mxu0 %v575_v27 }
 0x2fd   :  { %730 = vmatpush.msrb.mxu0 %v581_v37 }
 0x2ff   :  { %734 = vmatpush.msrb.mxu0 %v587_v42 }
 0x318   :  { %v445_v47 = vpop.permute.xlu1 %444 }
 0x319   :  { %v447_v48 = vsel %vm398_vm2, %v445_v47, 0.0  ;;  %v588_v47 = vsub.f32 %v586_v35, %v587_v42 }
 0x31a   :  { %448 = vadd.xlane.f32.xlu0 %v447_v48  ;;  %v593_v48 = vand.u32 4294901760, %v592_v43 }
 0x31b   :  { %v589_v61 = vand.u32 4294901760, %v588_v47 }
 0x31c   :  { %v594_v62 = vsub.f32 %v592_v43, %v593_v48  ;;  %738 = vmatpush.msrb.mxu0 %v593_v48 }
 0x31d   :  { %590 = vmatpush.msra.mxu1 %v589_v61 }
 0x31e   :  { %v595_v1 = vand.u32 4294901760, %v594_v62  ;;  %742 = vmatpush.msrb.mxu0 %v599_v63 }
 0x320   :  { %596 = vmatpush.msra.mxu1 %v595_v1  ;;  %746 = vmatpush.msrb.mxu0 %v605_v2 }
 0x322   :  { %602 = vmatpush.msra.mxu1 %v601_v5 }
 0x324   :  { %608 = vmatpush.msra.mxu1 %v607_v12 }
 0x326   :  { %757 = vmatpush.msrb.mxu1 %v1052_v52 }
 0x328   :  { %759 = vmatpush.msrb.mxu1 %v1054_v53 }
 0x32a   :  { %761 = vmatpush.msrb.mxu1 %v1056_v54  ;;  %v414_v52 = vpop.xlane.xlu2 %413 }
 0x32b   :  { %v415_v54 = vmul.f32 %v414_v52, %v1020_v28 }
 0x32c   :  { %763 = vmatpush.msrb.mxu1 %v1091_v4 }
 0x32e   :  { %765 = vmatpush.msrb.mxu1 %v1099_v7 }
 0x330   :  { %767 = vmatpush.msrb.mxu1 %v1110_v11 }
 0x332   :  { %769 = vmatpush.msrb.mxu1 %v1125_v17 }
 0x334   :  { %771 = vmatpush.msrb.mxu1 %v1142_v23 }
 0x336   :  { %773 = vmatpush.msrb.mxu1 %v1152_v29 }
 0x338   :  { %775 = vmatpush.msrb.mxu1 %v1167_v36 }
 0x33a   :  { %777 = vmatpush.msrb.mxu1 %v1176_v44 }
 0x33c   :  { %779 = vmatpush.msrb.mxu1 %v522_v50 }
 0x35d   :  { %v432_v55 = vpop.xlane.xlu0 %431 }
 0x35e   :  { %v433_v56 = vmul.f32 %v432_v55, %v1020_v28 }
 0x38d   :  { %v449_v53 = vpop.xlane.xlu0 %448 }
 0x38e   :  { %v450_v57 = vmul.f32 %v449_v53, %v1020_v28 }
 0x390   :  { %v455_v58 = vsel %vm453_vm4, %v433_v56, %v450_v57 }
 0x391   :  { %v458_v59 = vsel %vm456_vm5, %v415_v54, %v455_v58 }
 0x392   :  { %v460_v60 = vadd.f32 1e-05, %v458_v59 }
 0x394   :  { %897 = vrsqrt.f32 %v460_v60  ;;  %vm467_vm7 = vweird.f32 %v460_v60 }
 0x39a   :  { %v898_v4 = vpop.eup %897 }
 0x39b   :  { %v462_v6 = vmul.f32 %v898_v4, %v460_v60  ;;  %vm468_vm6 = vweird.f32 %v898_v4 }
 0x39c   :  { %vm469_vm8 = vmor %vm467_vm7, %vm468_vm6 }
 0x39d   :  { %v463_v7 = vmul.f32 %v898_v4, %v462_v6 }
 0x39f   :  { %v464_v9 = vmul.f32 0.5, %v463_v7 }
 0x3a1   :  { %v465_v10 = vsub.f32 1.5, %v464_v9 }
 0x3a3   :  { %v466_v11 = vmul.f32 %v898_v4, %v465_v10 }
 0x3a5   :  { %v470_v15 = vsel %vm469_vm8, %v898_v4, %v466_v11 }
 0x3a6   :  { %v471_v17 = vmul.f32 %v470_v15, %v459_v13 }
 0x3a8   :  { %v474_v19 = vmul.f32 %v890_v14, %v471_v17 }
 0x3aa   :  { %v477_v38 = vadd.f32 %v891_v18, %v474_v19 }
 0x3ac   :  { %v494_v41 = vsel %vm492_vm9, %v477_v38, 0 }
 0x3ad   :  { %v524_v20 = vand.u32 4294901760, %v494_v41 }
 0x3af   :  { %610 = vmatmul.f32.vlgmr.msra.gmra.mxu1 %v524_v20  ;;  %v525_v21 = vsub.f32 %v494_v41, %v524_v20 }
 0x3b1   :  { %656 = vmatmul.f32.vlgmr.msra.gmra.mxu2 %v525_v21  ;;  %v526_v16 = vand.u32 4294901760, %v525_v21 }
 0x3b3   :  { %691 = vmatmul.f32.vlgmr.msra.gmra.mxu3 %v526_v16  ;;  %v527_v22 = vsub.f32 %v525_v21, %v526_v16 }
 0x3b5   :  { %v528_v23 = vand.u32 4294901760, %v527_v22 }
 0x3b7   :  { %529 = vmatmul.f32.vlgmr.msra.gmra.mxu0 %v528_v23  ;;  %781 = vmatmul.f32.vlgmr.msrb.gmra.mxu1 %v524_v20 }
 0x3bf   :  { %748 = vmatmul.f32.vlgmr.msrb.gmra.mxu0 %v524_v20 }
 0x42c   :  { %v611_v25 = vpop.f32.mrf.mxu1 }
 0x434   :  { %v530_v26 = vpop.f32.mrf.mxu0  ;;  %v657_v30 = vpop.f32.mrf.mxu2 }
 0x435   :  { %v531_v27 = vadd.f32 %v892_v24, %v530_v26  ;;  %v782_v37 = vpop.f32.mrf.mxu1 }
 0x436   :  { %v692_v32 = vpop.f32.mrf.mxu3 }
 0x437   :  { %v612_v29 = vadd.f32 %v611_v25, %v531_v27 }
 0x439   :  { %v658_v31 = vadd.f32 %v657_v30, %v612_v29  ;;  %v893_v29 = vld [vmem:[%s1251_s6 + $0x1] ss:$0 sm:$0xff] }
 0x43b   :  { %v693_v33 = vadd.f32 %v692_v32, %v658_v31 }
 0x43c   :  { %v749_v35 = vpop.f32.mrf.mxu0 }
 0x43d   :  { %v750_v36 = vadd.f32 %v749_v35, %v693_v33 }
 0x43f   :  { %v783_v39 = vadd.f32 %v782_v37, %v750_v36 }
 0x441   :  { %v786_v40 = vmul.f32 0.70710677, %v783_v39  ;;  %v785_v11 = vmul.f32 0.5, %v783_v39 }
 0x443   :  { %v787_v42 = vmul.f32 %v786_v40, %v786_v40 }
 0x445   :  { %v788_v43 = vmin.f32 %v787_v42, 16.0 }
 0x447   :  { %v789_v44 = vmul.f32 2.1237322e-06, %v788_v43  ;;  %v800_v45 = vmul.f32 3.8918573e-05, %v788_v43 }
 0x449   :  { %v790_v46 = vadd.f32 0.00028619796, %v789_v44  ;;  %v801_v47 = vadd.f32 0.001143296, %v800_v45 }
 0x44b   :  { %v791_v48 = vmul.f32 %v790_v46, %v788_v43  ;;  %v802_v49 = vmul.f32 %v801_v47, %v788_v43 }
 0x44d   :  { %v803_v50 = vadd.f32 0.014752088, %v802_v49  ;;  %v792_v51 = vadd.f32 0.0036580483, %v791_v48 }
 0x44f   :  { %v804_v61 = vmul.f32 %v803_v50, %v788_v43  ;;  %v793_v63 = vmul.f32 %v792_v51, %v788_v43 }
 0x451   :  { %v805_v62 = vadd.f32 0.112945676, %v804_v61  ;;  %v794_v3 = vadd.f32 0.05243302, %v793_v63 }
 0x453   :  { %v806_v0 = vmul.f32 %v805_v62, %v788_v43  ;;  %v795_v8 = vmul.f32 %v794_v3, %v788_v43 }
 0x455   :  { %v807_v1 = vadd.f32 0.4994258, %v806_v0  ;;  %v796_v12 = vadd.f32 0.18741608, %v795_v8 }
 0x457   :  { %v808_v2 = vmul.f32 %v807_v1, %v788_v43  ;;  %v797_v52 = vmul.f32 %v796_v12, %v788_v43 }
 0x459   :  { %v809_v5 = vadd.f32 1.0, %v808_v2  ;;  %v798_v54 = vadd.f32 1.1283791, %v797_v52 }
 0x45b   :  { %899 = vrcp.f32 %v809_v5  ;;  %v821_v57 = vand.u32 2147483648, %v809_v5  ;;  %v819_v59 = vand.u32 2147483647, %v809_v5  ;;  %vm815_vm11 = vweird.f32 %v809_v5 }
 0x45c   :  { %v799_v6 = vmul.f32 %v798_v54, %v786_v40 }
 0x45d   :  { %v822_v4 = vor.u32 1.1754944e-38, %v821_v57  ;;  %vm820_vm13 = vcmp.eq.f32.partialorder %v819_v59, 8.507059e+37 }
 0x461   :  { %v900_v55 = vpop.eup %899 }
 0x462   :  { %v811_v53 = vmul.f32 %v900_v55, %v809_v5  ;;  %vm816_vm10 = vweird.f32 %v900_v55 }
 0x463   :  { %vm817_vm12 = vmor %vm815_vm11, %vm816_vm10 }
 0x464   :  { %v812_v56 = vsub.f32 1.0, %v811_v53 }
 0x466   :  { %v813_v58 = vmul.f32 %v900_v55, %v812_v56 }
 0x468   :  { %v814_v60 = vadd.f32 %v900_v55, %v813_v58 }
 0x46a   :  { %v818_v7 = vsel %vm817_vm12, %v900_v55, %v814_v60 }
 0x46b   :  { %v823_v9 = vsel %vm820_vm13, %v822_v4, %v818_v7 }
 0x46c   :  { %v824_v34 = vmul.f32 %v823_v9, %v799_v6 }
 0x46e   :  { %v874_v10 = vclamps-f32 %v824_v34, 1.0 }
 0x470   :  { %v827_v13 = vadd.f32 1.0, %v874_v10 }
 0x472   :  { %v828_v14 = vmul.f32 %v827_v13, %v785_v11 }
 0x474   :  { %v829_v15 = vsel %vm398_vm2, %v828_v14, 0.0 }
 0x475   :  { %830 = vadd.xlane.f32.xlu0 %v829_v15 }
 0x4e8   :  { %v831_v17 = vpop.xlane.xlu0 %830 }
 0x4e9   :  { %v832_v18 = vmul.f32 %v831_v17, %v1020_v28 }
 0x4eb   :  { %v833_v19 = vsub.f32 %v828_v14, %v832_v18 }
 0x4ed   :  { %v834_v38 = vmul.f32 %v833_v19, %v833_v19 }
 0x4ef   :  { %v835_v41 = vsel %vm398_vm2, %v834_v38, 0.0 }
 0x4f0   :  { %836 = vadd.xlane.f32.xlu1 %v835_v41 }
 0x563   :  { %v837_v20 = vpop.xlane.xlu1 %836 }
 0x564   :  { %v838_v21 = vmul.f32 %v837_v20, %v1020_v28  ;;  %v894_v28 = vld [vmem:[%s1251_s6 + $0x2] ss:$0 sm:$0xff] }
 0x566   :  { %v839_v16 = vadd.f32 1e-05, %v838_v21 }
 0x568   :  { %901 = vrsqrt.f32 %v839_v16  ;;  %vm846_vm15 = vweird.f32 %v839_v16 }
 0x56e   :  { %v902_v22 = vpop.eup %901 }
 0x56f   :  { %v841_v23 = vmul.f32 %v902_v22, %v839_v16  ;;  %vm847_vm14 = vweird.f32 %v902_v22 }
 0x570   :  { %vm848_vm0 = vmor %vm846_vm15, %vm847_vm14 }
 0x571   :  { %v842_v24 = vmul.f32 %v902_v22, %v841_v23 }
 0x573   :  { %v843_v25 = vmul.f32 0.5, %v842_v24 }
 0x575   :  { %v844_v26 = vsub.f32 1.5, %v843_v25 }
 0x577   :  { %v845_v27 = vmul.f32 %v902_v22, %v844_v26 }
 0x579   :  { %v849_v30 = vsel %vm848_vm0, %v902_v22, %v845_v27 }
 0x57a   :  { %v850_v31 = vmul.f32 %v849_v30, %v833_v19 }
 0x57c   :  { %v853_v32 = vmul.f32 %v893_v29, %v850_v31 }
 0x57e   :  { %v856_v33 = vadd.f32 %v894_v28, %v853_v32 }
 0x580   :  { %857 = vst.msk [vmem:[#allocation2] sm:$0xff] %vm398_vm2, %v856_v33 }
 0x581   :  { %868 = dma.vmem_to_hbm [thread:$0]  %s864_s18, 128, %s866_s21, [#allocation3]  }
 0x582   :  { %927 = dma.done.wait [#allocation3], 128  }
 0x583   :  { %928 = vsyncadd [#allocation3], 4294967168 }
 0x584   :  { %873 = vsyncpa [#allocation3], 1 }

</bundles_post_ra>
